<compile_context>
chip_gen: v7x
topology: tpu7x:2x2x1
jax: 0.10.0
libtpu: 0.0.40
codegen_flags: <defaults>
</compile_context>

<pallas_src>
import jax
import jax.numpy as jnp
from jax.experimental import pallas as pl
from jax.experimental.pallas import tpu as pltpu

_LANES = 128
_MAX_TILE_ROWS = 8192        # 8192*128*4B = 4 MiB per f32 input tile
_NUM_CORES = 2               # v7x megacore split; no-op cost on 1-TC chips
_VMEM_LIMIT_BYTES = 32 * 1024 * 1024


def _vq_loss_kernel(commit_ref, quant_ref, quant_part_ref, commit_part_ref):
    """One grid step: fold a (tile_rows, 128) block into a (1, 8, 128) partial."""
    i = pl.program_id(1)

    @pl.when(i == 0)
    def _():
        quant_part_ref[...] = jnp.zeros_like(quant_part_ref)
        commit_part_ref[...] = jnp.zeros_like(commit_part_ref)

    tile_rows = commit_ref.shape[0]
    sub = tile_rows // 8
    # Reshape keeps the trailing (8, 128) tile intact -> zero-copy view; the
    # leading-axis sum is a plain VPU vadd chain (one vreg partial per stream).
    c = commit_ref[...].astype(jnp.float32).reshape(sub, 8, _LANES).sum(axis=0)
    q = quant_ref[...].astype(jnp.float32).reshape(sub, 8, _LANES).sum(axis=0)
    commit_part_ref[...] += c[None]
    quant_part_ref[...] += q[None]


def _round_up(x, m):
    return ((x + m - 1) // m) * m


def _sublane_granularity(dtype):
    """Packed sublane granularity: 8 for 32-bit, 16 for bf16, 32 for 8-bit."""
    itemsize = jnp.dtype(dtype).itemsize
    return max(8, (8 * 4) // max(1, itemsize))


def _prep_2d(x, rows_padded):
    """Flatten and (only if needed) pad the ragged tail; keep native dtype."""
    flat = x.reshape(-1)
    n = flat.shape[0]
    total = rows_padded * _LANES
    if total != n:
        flat = jnp.pad(flat, (0, total - n))
    return flat.reshape(rows_padded, _LANES)


def vq_loss(commit_loss, quant_loss, beta):
    """Pallas implementation of VQLoss.forward.

    Returns a dict {'vq_quant_loss': scalar, 'vq_commit_loss': scalar}.
    """
    n_c = int(commit_loss.size)
    n_q = int(quant_loss.size)

    gran = max(_sublane_granularity(commit_loss.dtype),
               _sublane_granularity(quant_loss.dtype))

    rows = max(pl.cdiv(n_c, _LANES), pl.cdiv(n_q, _LANES))
    rows_padded = _round_up(rows, gran)
    if rows_padded <= _MAX_TILE_ROWS:
        tile_rows = rows_padded
    else:
        tile_rows = _MAX_TILE_ROWS                      # multiple of 32
        rows_padded = _round_up(rows_padded, tile_rows)

    total_tiles = rows_padded // tile_rows
    num_cores = _NUM_CORES if total_tiles >= _NUM_CORES else 1
    if total_tiles % num_cores:
        rows_padded = _round_up(rows_padded, tile_rows * num_cores)
        total_tiles = rows_padded // tile_rows
    inner = total_tiles // num_cores

    c2d = _prep_2d(commit_loss, rows_padded)
    q2d = _prep_2d(quant_loss, rows_padded)

    cost = pl.CostEstimate(
        flops=2 * (rows_padded * _LANES) * 2,
        bytes_accessed=c2d.size * c2d.dtype.itemsize
        + q2d.size * q2d.dtype.itemsize
        + 2 * num_cores * 8 * _LANES * 4,
        transcendentals=0,
    )

    in_map = lambda c, i, _inner=inner: (c * _inner + i, 0)
    out_map = lambda c, i: (c, 0, 0)

    quant_partials, commit_partials = pl.pallas_call(
        _vq_loss_kernel,
        out_shape=(
            jax.ShapeDtypeStruct((num_cores, 8, _LANES), jnp.float32),
            jax.ShapeDtypeStruct((num_cores, 8, _LANES), jnp.float32),
        ),
        grid_spec=pltpu.PrefetchScalarGridSpec(
            num_scalar_prefetch=0,
            grid=(num_cores, inner),
            in_specs=[
                pl.BlockSpec((tile_rows, _LANES), in_map),
                pl.BlockSpec((tile_rows, _LANES), in_map),
            ],
            out_specs=[
                pl.BlockSpec((1, 8, _LANES), out_map),
                pl.BlockSpec((1, 8, _LANES), out_map),
            ],
        ),
        compiler_params=pltpu.CompilerParams(
            dimension_semantics=("parallel", "arbitrary"),
            vmem_limit_bytes=_VMEM_LIMIT_BYTES,
        ),
        cost_estimate=cost,
    )(c2d, q2d)

    # Tiny final reduction (num_cores*8*128 elems) + scaling in plain JAX,
    # so `beta` may be a traced value.
    quant_mean = jnp.sum(quant_partials) * (1.0 / n_q)
    commit_mean = jnp.sum(commit_partials) * (1.0 / n_c)
    return {
        'vq_quant_loss': quant_mean,
        'vq_commit_loss': beta * commit_mean,
    }


if __name__ == "__main__":
    key = jax.random.PRNGKey(0)
    k1, k2 = jax.random.split(key)

    # Small, module-consistent shapes: per-element loss maps, NCHW-like.
    commit_loss = jax.random.uniform(k1, (2, 4, 16, 16), dtype=jnp.float32)
    quant_loss = jax.random.uniform(k2, (2, 4, 16, 16), dtype=jnp.float32)
    beta = 0.25

    out = vq_loss(commit_loss, quant_loss, beta)
    out = jax.block_until_ready(out)

    # Reference check against plain-JAX semantics of the PyTorch module.
    ref_quant = jnp.mean(quant_loss)
    ref_commit = beta * jnp.mean(commit_loss)
    assert jnp.allclose(out['vq_quant_loss'], ref_quant, rtol=1e-5, atol=1e-6)
    assert jnp.allclose(out['vq_commit_loss'], ref_commit, rtol=1e-5, atol=1e-6)

    print("KERNEL_OK")
</pallas_src>

<mosaic_0001>
module attributes {stable_mosaic.version = 11 : i64} {
  func.func @_vq_loss_kernel(%arg0: i32, %arg1: i32, %arg2: memref<16x128xf32, #tpu.memory_space<vmem>>, %arg3: memref<16x128xf32, #tpu.memory_space<vmem>>, %arg4: memref<1x8x128xf32, #tpu.memory_space<vmem>>, %arg5: memref<1x8x128xf32, #tpu.memory_space<vmem>>) attributes {dimension_semantics = [#tpu.dimension_semantics<parallel>, #tpu.dimension_semantics<arbitrary>], iteration_bounds = array<i64: 1, 1>, scalar_prefetch = 0 : i64, scratch_operands = 0 : i64, tpu.core_type = #tpu.core_type<tc>, window_params = [{transform_indices = @transform_0, window_bounds = array<i64: 16, 128>}, {transform_indices = @transform_1, window_bounds = array<i64: 16, 128>}, {transform_indices = @transform_2, window_bounds = array<i64: 1, 8, 128>}, {transform_indices = @transform_3, window_bounds = array<i64: 1, 8, 128>}]} {
    %c0_i32 = arith.constant 0 : i32
    %0 = arith.cmpi eq, %arg1, %c0_i32 : i32
    %1 = arith.extui %0 : i1 to i32
    %c0_i32_0 = arith.constant 0 : i32
    %2 = arith.cmpi ne, %1, %c0_i32_0 : i32
    scf.if %2 {
      %cst_17 = arith.constant 0.000000e+00 : f32
      %17 = vector.broadcast %cst_17 : f32 to vector<1x8x128xf32>
      %c0_18 = arith.constant 0 : index
      %c0_19 = arith.constant 0 : index
      %c0_20 = arith.constant 0 : index
      %18 = vector.load %arg4[%c0_18, %c0_19, %c0_20] : memref<1x8x128xf32, #tpu.memory_space<vmem>>, vector<1x8x128xf32>
      tpu.vector_store %arg4[%c0_18, %c0_19, %c0_20], %17 {strides = array<i32>} : memref<1x8x128xf32, #tpu.memory_space<vmem>>, vector<1x8x128xf32>,
      %cst_21 = arith.constant 0.000000e+00 : f32
      %19 = vector.broadcast %cst_21 : f32 to vector<1x8x128xf32>
      %c0_22 = arith.constant 0 : index
      %c0_23 = arith.constant 0 : index
      %c0_24 = arith.constant 0 : index
      %20 = vector.load %arg5[%c0_22, %c0_23, %c0_24] : memref<1x8x128xf32, #tpu.memory_space<vmem>>, vector<1x8x128xf32>
      tpu.vector_store %arg5[%c0_22, %c0_23, %c0_24], %19 {strides = array<i32>} : memref<1x8x128xf32, #tpu.memory_space<vmem>>, vector<1x8x128xf32>,
    } else {
    }
    %c0 = arith.constant 0 : index
    %c0_1 = arith.constant 0 : index
    %3 = vector.load %arg2[%c0, %c0_1] : memref<16x128xf32, #tpu.memory_space<vmem>>, vector<16x128xf32>
    %4 = vector.shape_cast %3 : vector<16x128xf32> to vector<2x8x128xf32>
    %cst = arith.constant dense<0.000000e+00> : vector<8x128xf32>
    %5 = vector.multi_reduction <add>, %4, %cst [0] : vector<2x8x128xf32> to vector<8x128xf32>
    %c0_2 = arith.constant 0 : index
    %c0_3 = arith.constant 0 : index
    %6 = vector.load %arg3[%c0_2, %c0_3] : memref<16x128xf32, #tpu.memory_space<vmem>>, vector<16x128xf32>
    %7 = vector.shape_cast %6 : vector<16x128xf32> to vector<2x8x128xf32>
    %cst_4 = arith.constant dense<0.000000e+00> : vector<8x128xf32>
    %8 = vector.multi_reduction <add>, %7, %cst_4 [0] : vector<2x8x128xf32> to vector<8x128xf32>
    %c0_5 = arith.constant 0 : index
    %c0_6 = arith.constant 0 : index
    %c0_7 = arith.constant 0 : index
    %9 = vector.load %arg5[%c0_5, %c0_6, %c0_7] : memref<1x8x128xf32, #tpu.memory_space<vmem>>, vector<1x8x128xf32>
    %10 = vector.shape_cast %5 : vector<8x128xf32> to vector<1x8x128xf32>
    %11 = arith.addf %9, %10 : vector<1x8x128xf32>
    %c0_8 = arith.constant 0 : index
    %c0_9 = arith.constant 0 : index
    %c0_10 = arith.constant 0 : index
    %12 = vector.load %arg5[%c0_8, %c0_9, %c0_10] : memref<1x8x128xf32, #tpu.memory_space<vmem>>, vector<1x8x128xf32>
    tpu.vector_store %arg5[%c0_8, %c0_9, %c0_10], %11 {strides = array<i32>} : memref<1x8x128xf32, #tpu.memory_space<vmem>>, vector<1x8x128xf32>,
    %c0_11 = arith.constant 0 : index
    %c0_12 = arith.constant 0 : index
    %c0_13 = arith.constant 0 : index
    %13 = vector.load %arg4[%c0_11, %c0_12, %c0_13] : memref<1x8x128xf32, #tpu.memory_space<vmem>>, vector<1x8x128xf32>
    %14 = vector.shape_cast %8 : vector<8x128xf32> to vector<1x8x128xf32>
    %15 = arith.addf %13, %14 : vector<1x8x128xf32>
    %c0_14 = arith.constant 0 : index
    %c0_15 = arith.constant 0 : index
    %c0_16 = arith.constant 0 : index
    %16 = vector.load %arg4[%c0_14, %c0_15, %c0_16] : memref<1x8x128xf32, #tpu.memory_space<vmem>>, vector<1x8x128xf32>
    tpu.vector_store %arg4[%c0_14, %c0_15, %c0_16], %15 {strides = array<i32>} : memref<1x8x128xf32, #tpu.memory_space<vmem>>, vector<1x8x128xf32>,
    return
  }
  func.func @transform_0(%arg0: i32, %arg1: i32) -> (i32, i32) {
    %c1_i32 = arith.constant 1 : i32
    %0 = arith.muli %arg0, %c1_i32 : i32
    %1 = arith.addi %0, %arg1 : i32
    %c0_i32 = arith.constant 0 : i32
    %c0_i32_0 = arith.constant 0 : i32
    return %1, %c0_i32 : i32, i32
  }
  func.func @transform_1(%arg0: i32, %arg1: i32) -> (i32, i32) {
    %c1_i32 = arith.constant 1 : i32
    %0 = arith.muli %arg0, %c1_i32 : i32
    %1 = arith.addi %0, %arg1 : i32
    %c0_i32 = arith.constant 0 : i32
    %c0_i32_0 = arith.constant 0 : i32
    return %1, %c0_i32 : i32, i32
  }
  func.func @transform_2(%arg0: i32, %arg1: i32) -> (i32, i32, i32) {
    %c0_i32 = arith.constant 0 : i32
    %c0_i32_0 = arith.constant 0 : i32
    %c0_i32_1 = arith.constant 0 : i32
    return %arg0, %c0_i32, %c0_i32_0 : i32, i32, i32
  }
  func.func @transform_3(%arg0: i32, %arg1: i32) -> (i32, i32, i32) {
    %c0_i32 = arith.constant 0 : i32
    %c0_i32_0 = arith.constant 0 : i32
    %c0_i32_1 = arith.constant 0 : i32
    return %arg0, %c0_i32, %c0_i32_0 : i32, i32, i32
  }
}

</mosaic_0001>

<bundles_post_ra>
// kernel: tpu_custom_call.1
= control target key start
LH: loop header
LB: loop body
LE: loop exit
PB: predicated region body
PF: predicated region fallthrough
CT: control target
= control target key end

     0   :  { %9 = vsyncpa [#allocation3], 0  ;;  %s280_s0 = inlined_call_operand.hbm [shape: f32[16,128], index: 0, kind: input, shape index: {}]   ;;  %s281_s1 = inlined_call_operand.hbm [shape: f32[16,128], index: 1, kind: input, shape index: {}]   ;;  %s282_s2 = inlined_call_operand.hbm [shape: f32[1,8,128], index: 2, kind: output, shape index: {0}]   ;;  %s283_s3 = inlined_call_operand.hbm [shape: f32[1,8,128], index: 3, kind: output, shape index: {1}]  }
   0x1   :  { %10 = vsyncpa [#allocation6], 0 }
   0x2   :  { %11 = vsyncpa [#allocation4], 0 }
   0x3   :  { %12 = vsyncpa [#allocation9], 0  ;;  %s206_s12 = smov [#allocation2]   ;;  %s110_s16 = scalar_lea.hbm %s280_s0, 256 }
   0x4   :  { %s22_s13 = sshll.u32 %s206_s12, 4  ;;  %p111_p0 = scmp.ne.s32.totalorder %s280_s0, %s110_s16  ;;  %s23_s13 = int_to_ptr.vmem [resolvable:$true] %s22_s13 }
   0x5   :  { %p114_p1 = scmp.lt.u32.totalorder %s110_s16, %s280_s0 }
   0x7   :  { %p116_p2 = pnand %p114_p1, %p111_p0 }
   0x9   :  { %119 = shalt.err (!%p116_p2)
}
   0xa   :  { %s120_s21 = scalar_lea.vmem %s23_s13, 256  ;;  %p125_p4 = scmp.lt.s32.totalorder %s23_s13, %s23_s13 }
   0xb   :  { %p121_p3 = scmp.ne.s32.totalorder %s23_s13, %s120_s21  ;;  %p126_p5 = scmp.lt.s32.totalorder %s120_s21, %s120_s21 }
   0xd   :  { %p127_p6 = por %p126_p5, %p125_p4 }
   0xf   :  { %p128_p7 = pnand %p127_p6, %p121_p3 }
  0x11   :  { %131 = shalt.err (!%p128_p7)
}
  0x12   :  { %s207_s22 = smov 128   ;;  %s208_s23 = smov 8  }
  0x13   :  { %28 = dma.hbm_to_vmem [thread:$0]  %s280_s0, 256, %s23_s13, [#allocation3], %s207_s22, %s207_s22, %s208_s23  }
  0x14   :  { %s209_s26 = smov [#allocation5]   ;;  %s132_s30 = scalar_lea.hbm %s281_s1, 256 }
  0x15   :  { %s38_s27 = sshll.u32 %s209_s26, 4  ;;  %p133_p8 = scmp.ne.s32.totalorder %s281_s1, %s132_s30  ;;  %s39_s27 = int_to_ptr.vmem [resolvable:$true] %s38_s27 }
  0x16   :  { %p136_p9 = scmp.lt.u32.totalorder %s132_s30, %s281_s1 }
  0x18   :  { %p138_p10 = pnand %p136_p9, %p133_p8 }
  0x1a   :  { %141 = shalt.err (!%p138_p10)
}
  0x1b   :  { %s142_s8 = scalar_lea.vmem %s39_s27, 256  ;;  %p147_p12 = scmp.lt.s32.totalorder %s39_s27, %s39_s27 }
  0x1c   :  { %p143_p11 = scmp.ne.s32.totalorder %s39_s27, %s142_s8  ;;  %p148_p13 = scmp.lt.s32.totalorder %s142_s8, %s142_s8 }
  0x1e   :  { %p149_p0 = por %p148_p13, %p147_p12 }
  0x20   :  { %p150_p1 = pnand %p149_p0, %p143_p11 }
  0x22   :  { %153 = shalt.err (!%p150_p1)
}
  0x23   :  { %44 = dma.hbm_to_vmem [thread:$0]  %s281_s1, 256, %s39_s27, [#allocation6], %s207_s22, %s207_s22, %s208_s23  }
  0x24   :  { %198 = dma.done.wait [#allocation3], 256  }
  0x25   :  { %199 = vsyncadd [#allocation3], 4294967040 }
  0x26   :  { %200 = dma.done.wait [#allocation6], 256  }
  0x27   :  { %201 = vsyncadd [#allocation6], 4294967040  ;;  %v61_v0 = vld [vmem:[#allocation2] sm:$0xff]  ;;  %v62_v1 = vld [vmem:[#allocation2 + $0x8] sm:$0xff]  ;;  %s210_s10 = smov [#allocation8]   ;;  %s211_s12 = smov [#allocation7]  }
  0x28   :  { %v64_v2 = vld [vmem:[#allocation5] sm:$0xff]  ;;  %s89_s11 = sshll.u32 %s210_s10, 4  ;;  %v63_v3 = vadd.f32 %v62_v1, %v61_v0  ;;  %v65_v4 = vld [vmem:[#allocation5 + $0x8] sm:$0xff]  ;;  %s79_s13 = sshll.u32 %s211_s12, 4  ;;  %s90_s11 = int_to_ptr.vmem [resolvable:$true] %s89_s11  ;;  %s80_s13 = int_to_ptr.vmem [resolvable:$true] %s79_s13 }
  0x29   :  { %v66_v5 = vadd.f32 %v65_v4, %v64_v2  ;;  %s154_s14 = scalar_lea.vmem %s90_s11, 128  ;;  %p159_p3 = scmp.lt.s32.totalorder %s90_s11, %s90_s11 }
  0x2a   :  { %69 = vst [vmem:[#allocation8] sm:$0xff] %v63_v3  ;;  %p155_p2 = scmp.ne.s32.totalorder %s90_s11, %s154_s14  ;;  %p160_p4 = scmp.lt.s32.totalorder %s154_s14, %s154_s14 }
  0x2b   :  { %72 = vst [vmem:[#allocation7] sm:$0xff] %v66_v5 }
  0x2c   :  { %p161_p5 = por %p160_p4, %p159_p3 }
  0x2e   :  { %p162_p6 = pnand %p161_p5, %p155_p2 }
  0x30   :  { %165 = shalt.err (!%p162_p6)
}
  0x31   :  { %s166_s16 = scalar_lea.hbm %s283_s3, 128 }
  0x32   :  { %p167_p7 = scmp.ne.s32.totalorder %s283_s3, %s166_s16  ;;  %p170_p8 = scmp.lt.u32.totalorder %s166_s16, %s283_s3 }
  0x34   :  { %p172_p9 = pnand %p170_p8, %p167_p7 }
  0x36   :  { %175 = shalt.err (!%p172_p9)
}
  0x37   :  { %92 = dma.vmem_to_hbm [thread:$0]  %s90_s11, 128, %s283_s3, [#allocation9]  }
  0x38   :  { %s176_s23 = scalar_lea.vmem %s80_s13, 128  ;;  %p181_p11 = scmp.lt.s32.totalorder %s80_s13, %s80_s13 }
  0x39   :  { %p177_p10 = scmp.ne.s32.totalorder %s80_s13, %s176_s23  ;;  %p182_p12 = scmp.lt.s32.totalorder %s176_s23, %s176_s23 }
  0x3b   :  { %p183_p13 = por %p182_p12, %p181_p11 }
  0x3d   :  { %p184_p0 = pnand %p183_p13, %p177_p10 }
  0x3f   :  { %187 = shalt.err (!%p184_p0)
}
  0x40   :  { %s188_s26 = scalar_lea.hbm %s282_s2, 128 }
  0x41   :  { %p189_p1 = scmp.ne.s32.totalorder %s282_s2, %s188_s26  ;;  %p192_p2 = scmp.lt.u32.totalorder %s188_s26, %s282_s2 }
  0x43   :  { %p194_p3 = pnand %p192_p2, %p189_p1 }
  0x45   :  { %197 = shalt.err (!%p194_p3)
}
  0x46   :  { %82 = dma.vmem_to_hbm [thread:$0]  %s80_s13, 128, %s282_s2, [#allocation4]  }
  0x47   :  { %202 = dma.done.wait [#allocation4], 128  }
  0x48   :  { %203 = vsyncadd [#allocation4], 4294967168 }
  0x49   :  { %204 = dma.done.wait [#allocation9], 128  }
  0x4a   :  { %205 = vsyncadd [#allocation9], 4294967168 }
  0x4b   :  { %99 = vsyncpa [#allocation3], 1 }
  0x4c   :  { %100 = vsyncpa [#allocation6], 1 }
  0x4d   :  { %101 = vsyncpa [#allocation4], 1 }
  0x4e   :  { %102 = vsyncpa [#allocation9], 1 }

</bundles_post_ra>
